<compile_context>
chip_gen: v6e
topology: v6e:2x2x1
jax: 0.10.0
libtpu: 0.0.40
codegen_flags: <defaults>
</compile_context>

<pallas_src>
import jax
import jax.numpy as jnp
from jax.experimental import pallas as pl
from jax.experimental.pallas import tpu as pltpu


def _round_up(x, m):
    return -(-x // m) * m


def _itemsize(dt):
    return jnp.dtype(dt).itemsize


def _unembed_kernel(x_ref, w_ref, b_ref, o_ref):
    # Collapsed-K path: x_ref (tm, K), w_ref (K, tn), b_ref (1, tn), o_ref (tm, tn).
    acc = jnp.dot(x_ref[...], w_ref[...], preferred_element_type=jnp.float32)
    o_ref[...] = (acc + b_ref[...].astype(jnp.float32)).astype(o_ref.dtype)


def _unembed_splitk_kernel(x_ref, w_ref, b_ref, o_ref, acc_ref):
    # Fallback for very large d_model: K innermost, f32 VMEM accumulator.
    k = pl.program_id(2)

    @pl.when(k == 0)
    def _():
        acc_ref[...] = jnp.zeros_like(acc_ref)

    acc_ref[...] += jnp.dot(x_ref[...], w_ref[...], preferred_element_type=jnp.float32)

    @pl.when(k == pl.num_programs(2) - 1)
    def _():
        o_ref[...] = (acc_ref[...] + b_ref[...].astype(jnp.float32)).astype(o_ref.dtype)


def _pick_tile(dim, max_tile, align):
    """Tile size (multiple of `align`, <= max(max_tile, align)) covering `dim`
    with minimal padding.  Returns (tile, n_blocks)."""
    dim_a = _round_up(dim, align)
    max_tile = max(align, _round_up(min(max_tile, dim_a), align))
    nblk = -(-dim_a // max_tile)
    tile = _round_up(-(-dim_a // nblk), align)
    nblk = -(-dim_a // tile)
    return tile, nblk


def unembed(normalized_resid_final, w_u, b_u, *, compute_dtype=jnp.bfloat16,
            out_dtype=None):
    """normalized_resid_final: [batch, posn, d_model]; w_u: [d_model, d_vocab];
    b_u: [d_vocab].  Returns [batch, posn, d_vocab]."""
    batch, posn, d_model = normalized_resid_final.shape
    d_model_w, d_vocab = w_u.shape
    assert d_model == d_model_w, "d_model mismatch between residual and W_U"
    assert b_u.shape == (d_vocab,)

    if out_dtype is None:
        out_dtype = normalized_resid_final.dtype
    if compute_dtype is None:
        compute_dtype = normalized_resid_final.dtype

    rows = batch * posn
    x2d = normalized_resid_final.reshape(rows, d_model)

    # bf16 MXU inputs (f32 accumulation) halve W_U HBM traffic; keep W_U in
    # `compute_dtype` at parameter-init time to make this cast a no-op.
    x2d = x2d.astype(compute_dtype)
    w2d = w_u.astype(compute_dtype)
    b2d = b_u.reshape(1, d_vocab)

    # ---- Generation-aware tile budget ------------------------------------
    try:
        vmem_cap = pltpu.get_tpu_info().vmem_capacity_bytes
    except Exception:
        vmem_cap = 64 << 20                      # conservative (v7x-sized)
    big_vmem = vmem_cap >= (100 << 20)           # v5e / v6e: 128 MiB physical

    if rows <= 64:                               # decode: pure W_U streaming
        tm_max, tn_max = max(8, _round_up(rows, 8)), 2048
    else:
        tm_max, tn_max = 1024, (1024 if big_vmem else 512)
    tk_max = 4096 if big_vmem else 2048

    # Prefer 256-multiples on K/N (v6e/v7x MXU is 256x256) only when that adds
    # no padding; 128 otherwise (optimal on v5e, avoids padded W_U copies).
    k_align = 256 if _round_up(d_model, 128) % 256 == 0 else 128
    n_align = 256 if _round_up(d_vocab, 128) % 256 == 0 else 128

    tm, nm = _pick_tile(rows, tm_max, 8)
    tn, nn_ = _pick_tile(d_vocab, tn_max, n_align)
    tk, nk = _pick_tile(d_model, tk_max, k_align)

    # Megacore: if there is only a single (row, vocab) block, split the vocab
    # axis so both TensorCores (v7x) have work; only when it adds no padding.
    if nm == 1 and nn_ == 1 and d_vocab >= 256 and _round_up(d_vocab, 128) % 256 == 0:
        tn, nn_ = _pick_tile(d_vocab, _round_up(d_vocab, 128) // 2, 128)

    rows_p, vocab_p, k_p = nm * tm, nn_ * tn, nk * tk

    # Pad only when a dim is not already tile-aligned (zero padding along K is
    # exact; padded rows / vocab columns are sliced away below).  For typical
    # aligned shapes these branches are skipped and no copies are made.
    if (rows_p, k_p) != x2d.shape:
        x2d = jnp.zeros((rows_p, k_p), x2d.dtype).at[:rows, :d_model].set(x2d)
    if (k_p, vocab_p) != w2d.shape:
        w2d = jnp.zeros((k_p, vocab_p), w2d.dtype).at[:d_model, :d_vocab].set(w2d)
    if vocab_p != d_vocab:
        b2d = jnp.zeros((1, vocab_p), b2d.dtype).at[:, :d_vocab].set(b2d)

    split_k = nk > 1

    # Explicit scoped-VMEM limit (v5e default is only 16 MiB).
    vmem_need = 2 * (tm * tk * _itemsize(compute_dtype)
                     + tk * tn * _itemsize(compute_dtype)
                     + tn * _itemsize(b2d.dtype)
                     + tm * tn * _itemsize(out_dtype))
    if split_k:
        vmem_need += tm * tn * 4
    vmem_budget = (100 << 20) if big_vmem else (48 << 20)
    vmem_limit = int(min(max(2 * vmem_need, 32 << 20), vmem_budget))

    cost = pl.CostEstimate(
        flops=2 * rows * d_model * d_vocab,
        transcendentals=0,
        bytes_accessed=(rows * d_model * _itemsize(compute_dtype)
                        + d_model * d_vocab * _itemsize(compute_dtype)
                        + d_vocab * _itemsize(b2d.dtype)
                        + rows * d_vocab * _itemsize(out_dtype)),
    )

    if split_k:
        kernel = _unembed_splitk_kernel
        grid = (nm, nn_, nk)
        in_specs = [
            pl.BlockSpec((tm, tk), lambda i, j, k: (i, k)),   # activations
            pl.BlockSpec((tk, tn), lambda i, j, k: (k, j)),   # W_U
            pl.BlockSpec((1, tn), lambda i, j, k: (0, j)),    # b_U
        ]
        out_specs = pl.BlockSpec((tm, tn), lambda i, j, k: (i, j))
        scratch_shapes = [pltpu.VMEM((tm, tn), jnp.float32)]
        dim_sem = ("parallel", "parallel", "arbitrary")
    else:
        kernel = _unembed_kernel
        grid = (nm, nn_)
        in_specs = [
            pl.BlockSpec((tm, tk), lambda i, j: (i, 0)),      # activations
            pl.BlockSpec((tk, tn), lambda i, j: (0, j)),      # W_U
            pl.BlockSpec((1, tn), lambda i, j: (0, j)),       # b_U
        ]
        out_specs = pl.BlockSpec((tm, tn), lambda i, j: (i, j))
        scratch_shapes = []
        dim_sem = ("parallel", "parallel")

    out_pad = pl.pallas_call(
        kernel,
        out_shape=jax.ShapeDtypeStruct((rows_p, vocab_p), out_dtype),
        grid_spec=pltpu.PrefetchScalarGridSpec(
            num_scalar_prefetch=0,
            grid=grid,
            in_specs=in_specs,
            out_specs=out_specs,
            scratch_shapes=scratch_shapes,
        ),
        compiler_params=pltpu.CompilerParams(
            dimension_semantics=dim_sem,
            vmem_limit_bytes=vmem_limit,
        ),
        cost_estimate=cost,
    )(x2d, w2d, b2d)

    out = out_pad
    if (rows_p, vocab_p) != (rows, d_vocab):
        out = out[:rows, :d_vocab]
    return out.reshape(batch, posn, d_vocab)


if __name__ == "__main__":
    # Small config consistent with the module: d_model / d_vocab lane-aligned.
    batch, posn, d_model, d_vocab = 2, 8, 128, 256
    init_range = 0.02

    key = jax.random.PRNGKey(0)
    kx, kw = jax.random.split(key, 2)
    normalized_resid_final = jax.random.normal(
        kx, (batch, posn, d_model), dtype=jnp.float32
    )
    # Parameters as in __init__: W_U ~ N(0, init_range), b_U = zeros.
    w_u = (init_range * jax.random.normal(kw, (d_model, d_vocab))).astype(jnp.float32)
    b_u = jnp.zeros((d_vocab,), dtype=jnp.float32)

    out = unembed(normalized_resid_final, w_u, b_u)
    out = jax.block_until_ready(out)

    # Reference with the same bf16 MXU inputs / f32 accumulation as the kernel.
    ref_bf16 = (
        jnp.einsum(
            "bpd,dv->bpv",
            normalized_resid_final.astype(jnp.bfloat16),
            w_u.astype(jnp.bfloat16),
            preferred_element_type=jnp.float32,
        )
        + b_u
    )
    # Full-f32 reference (the PyTorch module's semantics), loose tolerance for
    # the bf16 input cast.
    ref_f32 = jnp.einsum("bpd,dv->bpv", normalized_resid_final, w_u) + b_u

    assert out.shape == (batch, posn, d_vocab), "bad output shape"
    assert out.dtype == normalized_resid_final.dtype, "bad output dtype"
    assert jnp.allclose(out, ref_bf16, atol=1e-3, rtol=1e-3), "mismatch vs bf16 reference"
    assert jnp.allclose(out, ref_f32, atol=5e-2, rtol=5e-2), "mismatch vs f32 reference"

    print("KERNEL_OK")
</pallas_src>

<mosaic_0001>
module attributes {stable_mosaic.version = 11 : i64} {
  func.func @_unembed_kernel(%arg0: i32, %arg1: i32, %arg2: memref<16x128xbf16, #tpu.memory_space<vmem>>, %arg3: memref<128x128xbf16, #tpu.memory_space<vmem>>, %arg4: memref<1x128xf32, #tpu.memory_space<vmem>>, %arg5: memref<16x128xf32, #tpu.memory_space<vmem>>) attributes {dimension_semantics = [#tpu.dimension_semantics<parallel>, #tpu.dimension_semantics<parallel>], iteration_bounds = array<i64: 1, 2>, scalar_prefetch = 0 : i64, scratch_operands = 0 : i64, tpu.core_type = #tpu.core_type<tc>, window_params = [{transform_indices = @transform_0, window_bounds = array<i64: 16, 128>}, {transform_indices = @transform_1, window_bounds = array<i64: 128, 128>}, {transform_indices = @transform_2, window_bounds = array<i64: 1, 128>}, {transform_indices = @transform_3, window_bounds = array<i64: 16, 128>}]} {
    %c0 = arith.constant 0 : index
    %c0_0 = arith.constant 0 : index
    %0 = vector.load %arg2[%c0, %c0_0] : memref<16x128xbf16, #tpu.memory_space<vmem>>, vector<16x128xbf16>
    %c0_1 = arith.constant 0 : index
    %c0_2 = arith.constant 0 : index
    %1 = vector.load %arg3[%c0_1, %c0_2] : memref<128x128xbf16, #tpu.memory_space<vmem>>, vector<128x128xbf16>
    %cst = arith.constant dense<0.000000e+00> : vector<16x128xf32>
    %2 = tpu.matmul %0, %1, %cst {dimension_numbers = #tpu.dot_dimension_numbers<[1], [0], [0], [1], [0, 0, 1, 1], [], []>} : vector<16x128xbf16>, vector<128x128xbf16>, vector<16x128xf32> -> vector<16x128xf32>
    %c0_3 = arith.constant 0 : index
    %c0_4 = arith.constant 0 : index
    %3 = vector.load %arg4[%c0_3, %c0_4] : memref<1x128xf32, #tpu.memory_space<vmem>>, vector<1x128xf32>
    %4 = vector.broadcast %3 : vector<1x128xf32> to vector<16x128xf32>
    %5 = arith.addf %2, %4 : vector<16x128xf32>
    %c0_5 = arith.constant 0 : index
    %c0_6 = arith.constant 0 : index
    %6 = vector.load %arg5[%c0_5, %c0_6] : memref<16x128xf32, #tpu.memory_space<vmem>>, vector<16x128xf32>
    tpu.vector_store %arg5[%c0_5, %c0_6], %5 {strides = array<i32>} : memref<16x128xf32, #tpu.memory_space<vmem>>, vector<16x128xf32>,
    return
  }
  func.func @transform_0(%arg0: i32, %arg1: i32) -> (i32, i32) {
    %c0_i32 = arith.constant 0 : i32
    %c0_i32_0 = arith.constant 0 : i32
    return %arg0, %c0_i32 : i32, i32
  }
  func.func @transform_1(%arg0: i32, %arg1: i32) -> (i32, i32) {
    %c0_i32 = arith.constant 0 : i32
    %c0_i32_0 = arith.constant 0 : i32
    return %c0_i32, %arg1 : i32, i32
  }
  func.func @transform_2(%arg0: i32, %arg1: i32) -> (i32, i32) {
    %c0_i32 = arith.constant 0 : i32
    %c0_i32_0 = arith.constant 0 : i32
    return %c0_i32, %arg1 : i32, i32
  }
  func.func @transform_3(%arg0: i32, %arg1: i32) -> (i32, i32) {
    %c0_i32 = arith.constant 0 : i32
    return %arg0, %arg1 : i32, i32
  }
}

</mosaic_0001>

<bundles_post_ra>
// kernel: tpu_custom_call.1
= control target key start
LH: loop header
LB: loop body
LE: loop exit
PB: predicated region body
PF: predicated region fallthrough
CT: control target
= control target key end

     0   :  { %8 = vsyncpa [#allocation3], 0  ;;  %s987_s0 = inlined_call_operand.hbm [shape: bf16[16,128], index: 0, kind: input, shape index: {}]   ;;  %s988_s1 = inlined_call_operand.hbm [shape: bf16[128,256], index: 1, kind: input, shape index: {}]   ;;  %s989_s2 = inlined_call_operand.vmem [shape: f32[1,256], index: 2, kind: input, shape index: {}]   ;;  %s990_s3 = inlined_call_operand.hbm [shape: f32[16,256], index: 3, kind: output, shape index: {}]  }
   0x1   :  { %9 = vsyncpa [#allocation6], 0 }
   0x2   :  { %11 = vsyncpa [#allocation6 + $0x1], 0 }
   0x3   :  { %12 = vsyncpa [#allocation4], 0 }
   0x4   :  { %14 = vsyncpa [#allocation4 + $0x1], 0  ;;  %s801_s12 = smov 0   ;;  %s803_s13 = smov 0  }
   0x5   :  { %s805_s14 = smov 0   ;;  %s807_s15 = smov 0  }
   0x6   :  { %s809_s16 = smov 0   ;;  %s811_s17 = smov 0  }
   0x7 LB: > { %997 = sst [smem:[#allocation11_spill]] %s768_s17  ;;  %s486_s18 = sadd.s32 4294967295, %s768_s17   ;;  %s768_s17 = sphi %s811_s17, %s20_s17   ;;  %s764_s16 = sphi %s809_s16, %s1018_s16   ;;  %s760_s15 = sphi %s807_s15, %s1017_s15   ;;  %s756_s14 = sphi %s805_s14, %s1016_s14   ;;  %s752_s13 = sphi %s803_s13, %s1015_s13   ;;  %s748_s12 = sphi %s801_s12, %s1014_s12  }
   0x8   : > { %s487_s19 = sadd.s32 4294967294, %s768_s17   ;;  %p72_p0 = scmp.ne.s32.totalorder %s756_s14, %s752_s13 }
   0x9   : > { %p73_p1 = scmp.eq.s32.totalorder %s768_s17, 0  ;;  %p78_p2 = scmp.ne.s32.totalorder %s752_s13, %s748_s12 }
   0xa   : > { %p838_p3 = scmp.eq.s32.totalorder %s486_s18, 0  ;;  %p130_p5 = scmp.eq.s32.totalorder %s486_s18, 1 }
   0xb   : > { %p842_p4 = por %p73_p1, %p72_p0  ;;  %p136_p7 = scmp.eq.s32.totalorder %s487_s19, 1 }
   0xc   : > { %p848_p6 = por %p838_p3, %p78_p2  ;;  %p852_p8 = por %p130_p5, %p72_p0 }
   0xd   : > { %p488_p9 = scmp.ge.s32.totalorder %s768_s17, 1  ;;  %p857_p10 = por %p136_p7, %p78_p2 }
   0xe   : > { %s1000_s22 = scalar_select %p848_p6, 1, 0 }
   0xf   : > { %s1001_s23 = scalar_select %p852_p8, 1, 0 }
  0x10   : > { %s1002_s24 = scalar_select %p857_p10, 1, 0 }
  0x11   : > { %p143_p11 = scmp.lt.s32.totalorder %s768_s17, 3  ;;  %s770_s26 = smov [#allocation2]  }
  0x12   : > { %1003 = sst [smem:[#allocation12_spill]] %s1002_s24  ;;  %s158_s27 = sshll.u32 %s770_s26, 4  ;;  %s159_s27 = int_to_ptr.vmem [resolvable:$true] %s158_s27 }
  0x13   : > { %p862_p12 = pnand %p488_p9, %p143_p11  ;;  %p561_p1 = scmp.lt.s32.totalorder %s768_s17, 2 }
  0x14   : > { %s29_s30 = sadd.s32 1, %s764_s16  ;;  %s641_s4 = scalar_lea.vmem %s159_s27, 128 }
  0x15   : > { %p548_p13 = pneg %p862_p12  ;;  %p878_p2 = pnand %p561_p1, %p842_p4 }
  0x16   : > { %p642_p9 = scmp.ne.s32.totalorder %s159_s27, %s641_s4  ;;  %p649_p0 = scmp.lt.s32.totalorder %s159_s27, %s159_s27 }
  0x17   : > { %p872_p5 = pnand %p548_p13, %p838_p3  ;;  %p650_p8 = scmp.lt.s32.totalorder %s641_s4, %s641_s4 }
  0x19   : > { %p632_p7 = pneg %p872_p5  ;;  %p651_p6 = por %p650_p8, %p649_p0 }
  0x1b   : > { %p644_p11 = pnand %p642_p9, %p632_p7 }
  0x1d   : > { %p645_p10 = pneg %p644_p11 }
  0x1f   : > { %p652_p13 = pnand %p651_p6, %p645_p10 }
  0x21   : > { %655 = shalt.err (!%p652_p13)
}
  0x22   : > { %s996_s5 = smov 64   ;;  %s772_s6 = smov 4  }
  0x23   : > { %551 = dma.hbm_to_vmem [thread:$0]  (!%p872_p5), %s987_s0, 128, %s159_s27, [#allocation3], %s996_s5, %s996_s5, %s772_s6  }
  0x24   : > { %p30_p4 = scmp.ge.s32.totalorder %s29_s30, 2  ;;  %s65_s9 = sadd.s32 1, %s756_s14 }
  0x25   : > { %s172_s10 = sand.u32 1, %s756_s14   ;;  %s492_s19 = sshll.u32 %s764_s16, 6 }
  0x26   : > { %s1020_s30 = smov (%p30_p4, %s29_s30), 0  ;;  %s491_s11 = sshll.u32 %s172_s10, 6 }
  0x27   : > { %s62_s18 = ssub.s32 %s764_s16, %s1020_s30  ;;  %s181_s28 = scalar_lea.hbm %s988_s1, %s492_s19 }
  0x28   : > { %p63_p6 = scmp.eq.s32.totalorder %s62_s18, 0  ;;  %s176_s4 = scalar_lea.vmem [#allocation5], %s491_s11 }
  0x29   : > { %s182_s17 = sshll.u32 %s176_s4, 4  ;;  %s173_s27 = scalar_lea.sflag [#allocation6], %s172_s10  ;;  %s183_s17 = int_to_ptr.vmem [resolvable:$true] %s182_s17 }
  0x2a   : > { %s904_s24 = scalar_select %p63_p6, %s756_s14, %s65_s9  }
  0x2b   : > { %p658_p8 = pneg %p878_p2  ;;  %s669_s7 = scalar_lea.vmem %s183_s17, 1024 }
  0x2c   : > { %p670_p10 = scmp.ne.s32.totalorder %s183_s17, %s669_s7  ;;  %s773_s8 = smov [#allocation5]  }
  0x2d   : > { %s674_s5 = sshll.u32 %s773_s8, 4  ;;  %s675_s5 = int_to_ptr.vmem [resolvable:$false] %s674_s5 }
  0x2e   : > { %p672_p0 = pnand %p670_p10, %p658_p8  ;;  %s676_s18 = scalar_lea.vmem %s675_s5, 2048 }
  0x2f   : > { %p677_p5 = scmp.lt.s32.totalorder %s183_s17, %s675_s5  ;;  %p678_p7 = scmp.lt.s32.totalorder %s676_s18, %s669_s7 }
  0x30   : > { %p673_p1 = pneg %p672_p0 }
  0x31   : > { %p679_p9 = por %p678_p7, %p677_p5 }
  0x33   : > { %p680_p11 = pnand %p679_p9, %p673_p1 }
  0x35   : > { %683 = shalt.err (!%p680_p11)
}
  0x36   : > { %s774_s11 = smov 128   ;;  %s1007_s9 = smov 64  }
  0x37   : > { %555 = dma.hbm_to_vmem [thread:$0]  (!%p878_p2), %s181_s28, 1024, %s183_s17, %s173_s27, %s774_s11, %s1007_s9, %s772_s6  }
  0x38   : > { %200 = sbr.rel (%p862_p12) target bundleno = 313 (0x139), region = 32 }
  0x3d   : > { %735 = dma.done.wait (%p838_p3), [#allocation3], 128  }
  0x3e   : > { %737 = vsyncadd (%p838_p3), [#allocation3], 4294967168  ;;  %s919_s5 = sand.u32 1, %s752_s13   ;;  %p1008_p13 = scmp.ne.s32.totalorder %s1000_s22, 0 }
  0x3f   : > { %s495_s10 = sshll.u32 %s919_s5, 6  ;;  %s207_s29 = scalar_lea.sflag [#allocation6], %s919_s5 }
  0x40   : > { %s210_s19 = scalar_lea.vmem [#allocation5], %s495_s10 }
  0x41   : > { %739 = dma.done.wait (%p1008_p13), %s207_s29, 1024  }
  0x42   : > { %741 = vsyncadd (%p1008_p13), %s207_s29, 4294966272  ;;  %v775_v0 = vmov 0.0   ;;  %vm776_vm0 = vmmov 0   ;;  %v621_v1 = vld [vmem:[%s210_s19 + $0x38] sm:$0xff]   ;;  %v622_v2 = vld [vmem:[%s210_s19 + $0x30] sm:$0xff]   ;;  %p237_p3 = scmp.lt.s32.totalorder %s760_s15, 1 }
  0x43   : > { %520 = vmatprep.subr.bf16.mxu0 %v775_v0  ;;  %536 = vmatprep.mubr.msk.bf16.mxu0 %vm776_vm0, %v775_v0  ;;  %v623_v3 = vld [vmem:[%s210_s19 + $0x28] sm:$0xff]   ;;  %v624_v4 = vld [vmem:[%s210_s19 + $0x20] sm:$0xff]   ;;  %v625_v5 = vld [vmem:[%s210_s19 + $0x18] sm:$0xff]   ;;  %s496_s6 = sshll.u32 %s919_s5, 4  ;;  %s508_s28 = sshll.u32 %s760_s15, 7 }
  0x44   : > { %521 = vmatpush3.bf16.msra.mxu0 %v621_v1  ;;  %v626_v6 = vld [vmem:[%s210_s19 + $0x10] sm:$0xff]   ;;  %v627_v7 = vld [vmem:[%s210_s19 + $0x8] sm:$0xff]   ;;  %v628_v8 = vld [vmem:[%s210_s19] sm:$0xff]   ;;  %s238_s17 = scalar_select %p237_p3, %s760_s15, 1 }
  0x45   : > { %522 = vmatprep.subr.bf16.mxu0 %v775_v0  ;;  %v629_v9 = vld [vmem:[#allocation2] sm:$0xff]   ;;  %s235_s21 = scalar_lea.vmem [#allocation7], %s496_s6  ;;  %s939_s7 = scalar_lea.hbm %s990_s3, %s508_s28 }
  0x46   : > { %s239_s25 = scalar_lea.vmem %s989_s2, %s238_s17  ;;  %s380_s26 = sshll.u32 %s235_s21, 4  ;;  %s934_s26 = int_to_ptr.vmem [resolvable:$true] %s380_s26 }
  0x47   : > { %v497_v10 = vld [vmem:[%s239_s25] ss:$0 sm:$0xff]  ;;  %s365_s8 = scalar_lea.sflag [#allocation4], %s919_s5  ;;  %s684_s18 = scalar_lea.vmem %s934_s26, 256 }
  0x48   : > { %523 = vmatpush3.bf16.msra.mxu0 %v622_v2  ;;  %p685_p12 = scmp.ne.s32.totalorder %s934_s26, %s684_s18  ;;  %p1009_p2 = scmp.ne.s32.totalorder %s1001_s23, 0 }
  0x49   : > { %524 = vmatprep.subr.bf16.mxu0 %v775_v0  ;;  %s777_s15 = smov [#allocation7]  }
  0x4a   : > { %p686_p4 = pnand %p685_p12, %p1009_p2  ;;  %s688_s11 = sshll.u32 %s777_s15, 4  ;;  %s689_s11 = int_to_ptr.vmem [resolvable:$false] %s688_s11 }
  0x4b   : > { %s690_s9 = scalar_lea.vmem %s689_s11, 512  ;;  %p691_p8 = scmp.lt.s32.totalorder %s934_s26, %s689_s11 }
  0x4c   : > { %525 = vmatpush3.bf16.msra.mxu0 %v623_v3  ;;  %p687_p6 = pneg %p686_p4  ;;  %p692_p10 = scmp.lt.s32.totalorder %s690_s9, %s684_s18 }
  0x4d   : > { %526 = vmatprep.subr.bf16.mxu0 %v775_v0 }
  0x4e   : > { %p693_p0 = por %p692_p10, %p691_p8 }
  0x50   : > { %527 = vmatpush3.bf16.msra.mxu0 %v624_v4  ;;  %p694_p1 = pnand %p693_p0, %p687_p6 }
  0x51   : > { %528 = vmatprep.subr.bf16.mxu0 %v775_v0 }
  0x54   : > { %529 = vmatpush3.bf16.msra.mxu0 %v625_v5 }
  0x55   : > { %530 = vmatprep.subr.bf16.mxu0 %v775_v0 }
  0x58   : > { %531 = vmatpush3.bf16.msra.mxu0 %v626_v6 }
  0x59   : > { %532 = vmatprep.subr.bf16.mxu0 %v775_v0 }
  0x5c   : > { %533 = vmatpush3.bf16.msra.mxu0 %v627_v7 }
  0x5d   : > { %534 = vmatprep.subr.bf16.mxu0 %v775_v0 }
  0x60   : > { %535 = vmatpush3.bf16.msra.mxu0 %v628_v8 }
  0x63   : > { %537 = vmatmul.mubr.bf16.vlgmr.msra.gmra.mxu0 %v629_v9 }
 0x123   : > { %v355_v11 = vpop.f32.mrf.mxu0 }
 0x124   : > { %v356_v12 = vadd.f32 %v497_v10, %v355_v11 }
 0x125   : > { %v538_v13 = vpop.f32.mrf.mxu0 }
 0x126   : > { %362 = vst [vmem:[%s235_s21] sm:$0xff] %v356_v12 }
 0x127   : > { %v358_v14 = vpop.f32.mrf.mxu0 }
 0x128   : > { %v359_v15 = vadd.f32 %v497_v10, %v358_v14 }
 0x129   : > { %v539_v16 = vpop.f32.mrf.mxu0 }
 0x12a   : > { %363 = vst [vmem:[%s235_s21 + $0x8] sm:$0xff] %v359_v15 }
 0x12b   : > { %697 = shalt.err (!%p694_p1)
}
 0x12c   : > { %s698_s10 = scalar_lea.hbm %s939_s7, 256  ;;  %s702_s17 = scalar_lea.hbm %s990_s3, 512 }
 0x12d   : > { %p699_p5 = scmp.ne.s32.totalorder %s939_s7, %s698_s10  ;;  %p703_p11 = scmp.lt.s32.totalorder %s939_s7, %s990_s3 }
 0x12e   : > { %p704_p13 = scmp.lt.s32.totalorder %s702_s17, %s698_s10 }
 0x12f   : > { %p700_p7 = pnand %p699_p5, %p1009_p2 }
 0x130   : > { %p705_p3 = por %p704_p13, %p703_p11 }
 0x131   : > { %p701_p9 = pneg %p700_p7 }
 0x133   : > { %p706_p12 = pnand %p705_p3, %p701_p9 }
 0x135   : > { %709 = shalt.err (!%p706_p12)
}
 0x136   : > { %s778_s25 = smov 128   ;;  %s779_s6 = smov 256  }
 0x137   : > { %s780_s21 = smov 8  }
 0x138   : > { %546 = dma.vmem_to_hbm [thread:$0]  (%p1009_p2), %s934_s26, 256, %s939_s7, %s365_s8, %s778_s25, %s779_s6, %s780_s21  }
 0x139 PF: > { %s1010_s28 = sld [smem:[#allocation12_spill]]  ;;  %s395_s27 = sand.u32 1, %s748_s12  }
 0x13a   : > { %s1011_s4 = sld [smem:[#allocation11_spill]]  ;;  %s396_s18 = scalar_lea.sflag [#allocation4], %s395_s27 }
 0x13f   : > { %p1012_p4 = scmp.ne.s32.totalorder %s1010_s28, 0 }
 0x140   : > { %p1013_p6 = scmp.ge.s32.totalorder %s1011_s4, 2 }
 0x142   : > { %p557_p8 = pnand %p1013_p6, %p1012_p4 }
 0x144   : > { %p558_p10 = pneg %p557_p8 }
 0x146   : > { %743 = dma.done.wait (%p558_p10), %s396_s18, 256  }
 0x147   : > { %745 = vsyncadd (%p558_p10), %s396_s18, 4294967040  ;;  %s20_s17 = sadd.s32 1, %s1011_s4   ;;  %s1014_s12 = smov %s752_s13 }
 0x148   : > { %p17_p0 = scmp.ge.s32.totalorder %s20_s17, 4   ;;  %s1015_s13 = smov %s756_s14 }
 0x149   : > { %s1016_s14 = smov %s904_s24  ;;  %s1017_s15 = smov %s764_s16 }
 0x14a   : > { %s1018_s16 = smov %s1020_s30  ;;  %19 = sbr.rel (!%p17_p0) target bundleno = 7 (0x7), region = 86 }
 0x14f   :  { %401 = vsyncpa [#allocation3], 1 }
 0x150   :  { %403 = vsyncpa [#allocation3 + $0x1], 1 }
 0x151   :  { %404 = vsyncpa [#allocation6], 1 }
 0x152   :  { %406 = vsyncpa [#allocation6 + $0x1], 1 }
 0x153   :  { %407 = vsyncpa [#allocation4], 1 }
 0x154   :  { %409 = vsyncpa [#allocation4 + $0x1], 1 }

</bundles_post_ra>
